<compile_context>
chip_gen: v7x
topology: tpu7x:2x2x1
jax: 0.10.0
libtpu: 0.0.40
codegen_flags: <defaults>
</compile_context>

<pallas_src>
import functools

import jax
import jax.numpy as jnp
from jax.experimental import pallas as pl
from jax.experimental.pallas import tpu as pltpu


def _dc_topk_kernel(tgt_ref, x_ref, cepix_ref, tp_ref, fp_ref, fn_ref,
                    *, hw, tn, need_mask):
    b = pl.program_id(0)
    i = pl.program_id(1)

    # Initialize the grid-resident dice accumulators on the very first step.
    @pl.when((b == 0) & (i == 0))
    def _():
        tp_ref[...] = jnp.zeros_like(tp_ref)
        fp_ref[...] = jnp.zeros_like(fp_ref)
        fn_ref[...] = jnp.zeros_like(fn_ref)

    x = x_ref[...].astype(jnp.float32)            # (C, tn) logits (f32 math)
    tgt = tgt_ref[...]                            # (1, tn) int32 labels
    C = x.shape[0]

    # One-hot of labels along the class (sublane) axis; padded labels are -1
    # and therefore never match, masking themselves out of tp / fn / cnt.
    class_ids = jax.lax.broadcasted_iota(jnp.int32, (C, tn), 0)
    onehot = (class_ids == tgt).astype(jnp.float32)

    # Numerically stable softmax over the class axis.
    m = jnp.max(x, axis=0, keepdims=True)         # (1, tn)
    e = jnp.exp(x - m)                            # (C, tn)
    s = jnp.sum(e, axis=0, keepdims=True)         # (1, tn)
    inv_s = pl.reciprocal(s)                      # exact reciprocal
    p = e * inv_s                                 # softmax probs (C, tn)

    # Per-pixel cross-entropy without materializing full log-softmax.
    x_t = jnp.sum(x * onehot, axis=0, keepdims=True)   # logit of target class
    logpt = x_t - m - jnp.log(s)                        # (1, tn)
    cepix_ref[...] = -logpt                             # per-pixel CE tile

    if need_mask:
        lanes = jax.lax.broadcasted_iota(jnp.int32, (1, tn), 1)
        valid = ((i * tn + lanes) < hw).astype(jnp.float32)
        p = p * valid                      # exclude padded pixels from psum/tp

    # Soft-Dice statistics (batch_dice=True => accumulate over batch+spatial).
    tp_t = jnp.sum(p * onehot, axis=1, keepdims=True)   # (C, 1)
    psum = jnp.sum(p, axis=1, keepdims=True)            # (C, 1) sum of probs
    cnt = jnp.sum(onehot, axis=1, keepdims=True)        # (C, 1) label counts

    tp_ref[...] += tp_t
    fp_ref[...] += psum - tp_t
    fn_ref[...] += cnt - tp_t


def dc_and_topk_loss(net_output, target, *, k=10, smooth=1e-5,
                     weight_ce=1.0, weight_dice=1.0, tn_max=2048):
    """net_output: (B, C, H, W) float logits (f32 or bf16).
    target: (B, 1, H, W) integer labels."""
    B, C, H, W = net_output.shape
    HW = H * W
    N = B * HW

    # Pick the largest lane-aligned tile up to tn_max; pad the pixel axis.
    tn = min(int(tn_max), pl.cdiv(HW, 128) * 128)
    n_tiles = pl.cdiv(HW, tn)
    HW_pad = n_tiles * tn
    pad = HW_pad - HW

    x = net_output.reshape(B, C, HW)                 # native layout & dtype
    t = target.reshape(B, 1, HW).astype(jnp.int32)
    if pad:
        x = jnp.pad(x, ((0, 0), (0, 0), (0, pad)))
        t = jnp.pad(t, ((0, 0), (0, 0), (0, pad)), constant_values=-1)

    kernel = functools.partial(_dc_topk_kernel, hw=HW, tn=tn,
                               need_mask=(pad > 0))

    ce_pix, tp, fp, fn = pl.pallas_call(
        kernel,
        out_shape=(
            jax.ShapeDtypeStruct((B, 1, HW_pad), jnp.float32),  # per-pixel CE
            jax.ShapeDtypeStruct((C, 1), jnp.float32),          # tp per class
            jax.ShapeDtypeStruct((C, 1), jnp.float32),          # fp per class
            jax.ShapeDtypeStruct((C, 1), jnp.float32),          # fn per class
        ),
        grid=(B, n_tiles),
        in_specs=[
            pl.BlockSpec((None, 1, tn), lambda b, i: (b, 0, i)),   # labels
            pl.BlockSpec((None, C, tn), lambda b, i: (b, 0, i)),   # logits
        ],
        out_specs=(
            pl.BlockSpec((None, 1, tn), lambda b, i: (b, 0, i)),
            pl.BlockSpec((C, 1), lambda b, i: (0, 0)),
            pl.BlockSpec((C, 1), lambda b, i: (0, 0)),
            pl.BlockSpec((C, 1), lambda b, i: (0, 0)),
        ),
        compiler_params=pltpu.CompilerParams(
            dimension_semantics=("arbitrary", "arbitrary")),
    )(t, x)

    # --- TopK cross-entropy (k percent of voxels, mean of largest losses) ---
    ce_flat = ce_pix[:, 0, :HW].reshape(-1)          # drop padded lanes
    n_topk = max(int(N * k / 100), 1)
    ce_loss = jnp.mean(jax.lax.top_k(ce_flat, n_topk)[0])

    # --- SoftDiceLoss (batch_dice=True, do_bg=False) ---
    tp = tp[:, 0]
    fp = fp[:, 0]
    fn = fn[:, 0]
    nominator = 2.0 * tp + smooth
    denominator = jnp.clip(2.0 * tp + fp + fn + smooth, 1e-8)
    dc = nominator / denominator
    dc_loss = -jnp.mean(dc[1:])                      # drop background class

    return weight_ce * ce_loss + weight_dice * dc_loss


def _reference_loss(net_output, target, *, k=10, smooth=1e-5,
                    weight_ce=1.0, weight_dice=1.0):
    """Pure-JAX reference mirroring the PyTorch module (ignore_label=None)."""
    B, C, H, W = net_output.shape
    x = net_output.astype(jnp.float32)
    logp = jax.nn.log_softmax(x, axis=1)
    p = jax.nn.softmax(x, axis=1)
    lbl = target[:, 0]
    oh = jnp.transpose(jax.nn.one_hot(lbl, C, dtype=jnp.float32), (0, 3, 1, 2))
    axes = (0, 2, 3)
    tp = jnp.sum(p * oh, axis=axes)
    fp = jnp.sum(p * (1 - oh), axis=axes)
    fn = jnp.sum((1 - p) * oh, axis=axes)
    dc = (2 * tp + smooth) / jnp.clip(2 * tp + fp + fn + smooth, 1e-8)
    dc_loss = -jnp.mean(dc[1:])
    ce_pix = -jnp.sum(logp * oh, axis=1)             # (B, H, W)
    n_topk = max(int(ce_pix.size * k / 100), 1)
    ce_loss = jnp.mean(jax.lax.top_k(ce_pix.reshape(-1), n_topk)[0])
    return weight_ce * ce_loss + weight_dice * dc_loss


if __name__ == "__main__":
    key = jax.random.PRNGKey(0)
    k1, k2 = jax.random.split(key)

    B, C, H, W = 2, 4, 16, 16
    net_output = jax.random.normal(k1, (B, C, H, W), dtype=jnp.float32)
    target = jax.random.randint(k2, (B, 1, H, W), 0, C, dtype=jnp.int32)

    loss = dc_and_topk_loss(net_output, target)
    loss = jax.block_until_ready(loss)

    ref = _reference_loss(net_output, target)
    assert jnp.allclose(loss, ref, rtol=1e-4, atol=1e-5), (loss, ref)

    print("KERNEL_OK")
</pallas_src>

<mosaic_0001>
module attributes {stable_mosaic.version = 11 : i64} {
  func.func @_dc_topk_kernel(%arg0: i32, %arg1: i32, %arg2: memref<1x1x256xi32, #tpu.memory_space<vmem>>, %arg3: memref<1x4x256xf32, #tpu.memory_space<vmem>>, %arg4: memref<1x1x256xf32, #tpu.memory_space<vmem>>, %arg5: memref<4x1xf32, #tpu.memory_space<vmem>>, %arg6: memref<4x1xf32, #tpu.memory_space<vmem>>, %arg7: memref<4x1xf32, #tpu.memory_space<vmem>>) attributes {dimension_semantics = [#tpu.dimension_semantics<arbitrary>, #tpu.dimension_semantics<arbitrary>], iteration_bounds = array<i64: 2, 1>, scalar_prefetch = 0 : i64, scratch_operands = 0 : i64, tpu.core_type = #tpu.core_type<tc>, window_params = [{transform_indices = @transform_0, window_bounds = array<i64: 1, 1, 256>}, {transform_indices = @transform_1, window_bounds = array<i64: 1, 4, 256>}, {transform_indices = @transform_2, window_bounds = array<i64: 1, 1, 256>}, {pipeline_mode = #tpu.pipeline_mode<synchronous>, transform_indices = @transform_3, window_bounds = array<i64: 4, 1>}, {pipeline_mode = #tpu.pipeline_mode<synchronous>, transform_indices = @transform_4, window_bounds = array<i64: 4, 1>}, {pipeline_mode = #tpu.pipeline_mode<synchronous>, transform_indices = @transform_5, window_bounds = array<i64: 4, 1>}]} {
    %c0_i32 = arith.constant 0 : i32
    %0 = arith.cmpi eq, %arg0, %c0_i32 : i32
    %c0_i32_0 = arith.constant 0 : i32
    %1 = arith.cmpi eq, %arg1, %c0_i32_0 : i32
    %2 = arith.andi %0, %1 : i1
    %3 = arith.extui %2 : i1 to i32
    %c0_i32_1 = arith.constant 0 : i32
    %4 = arith.cmpi ne, %3, %c0_i32_1 : i32
    scf.if %4 {
      %cst_28 = arith.constant 0.000000e+00 : f32
      %53 = vector.broadcast %cst_28 : f32 to vector<4x1xf32>
      %c0_29 = arith.constant 0 : index
      %c0_30 = arith.constant 0 : index
      %54 = vector.load %arg5[%c0_29, %c0_30] : memref<4x1xf32, #tpu.memory_space<vmem>>, vector<4x1xf32>
      tpu.vector_store %arg5[%c0_29, %c0_30], %53 {strides = array<i32>} : memref<4x1xf32, #tpu.memory_space<vmem>>, vector<4x1xf32>,
      %cst_31 = arith.constant 0.000000e+00 : f32
      %55 = vector.broadcast %cst_31 : f32 to vector<4x1xf32>
      %c0_32 = arith.constant 0 : index
      %c0_33 = arith.constant 0 : index
      %56 = vector.load %arg6[%c0_32, %c0_33] : memref<4x1xf32, #tpu.memory_space<vmem>>, vector<4x1xf32>
      tpu.vector_store %arg6[%c0_32, %c0_33], %55 {strides = array<i32>} : memref<4x1xf32, #tpu.memory_space<vmem>>, vector<4x1xf32>,
      %cst_34 = arith.constant 0.000000e+00 : f32
      %57 = vector.broadcast %cst_34 : f32 to vector<4x1xf32>
      %c0_35 = arith.constant 0 : index
      %c0_36 = arith.constant 0 : index
      %58 = vector.load %arg7[%c0_35, %c0_36] : memref<4x1xf32, #tpu.memory_space<vmem>>, vector<4x1xf32>
      tpu.vector_store %arg7[%c0_35, %c0_36], %57 {strides = array<i32>} : memref<4x1xf32, #tpu.memory_space<vmem>>, vector<4x1xf32>,
    } else {
    }
    %c0 = arith.constant 0 : index
    %c0_2 = arith.constant 0 : index
    %c0_3 = arith.constant 0 : index
    %5 = vector.load %arg3[%c0, %c0_2, %c0_3] : memref<1x4x256xf32, #tpu.memory_space<vmem>>, vector<1x4x256xf32>
    %6 = vector.shape_cast %5 : vector<1x4x256xf32> to vector<4x256xf32>
    %c0_4 = arith.constant 0 : index
    %c0_5 = arith.constant 0 : index
    %c0_6 = arith.constant 0 : index
    %7 = vector.load %arg2[%c0_4, %c0_5, %c0_6] : memref<1x1x256xi32, #tpu.memory_space<vmem>>, vector<1x1x256xi32>
    %8 = vector.shape_cast %7 : vector<1x1x256xi32> to vector<1x256xi32>
    %9 = tpu.iota {dimensions = array<i32: 0>} : vector<4x256xi32>
    %10 = vector.broadcast %8 : vector<1x256xi32> to vector<4x256xi32>
    %11 = arith.cmpi eq, %9, %10 : vector<4x256xi32>
    %12 = arith.extui %11 : vector<4x256xi1> to vector<4x256xi32>
    %13 = arith.sitofp %12 : vector<4x256xi32> to vector<4x256xf32>
    %cst = arith.constant dense<0xFF800000> : vector<256xf32>
    %14 = vector.multi_reduction <maximumf>, %6, %cst [0] : vector<4x256xf32> to vector<256xf32>
    %15 = vector.shape_cast %14 : vector<256xf32> to vector<1x256xf32>
    %16 = vector.broadcast %15 : vector<1x256xf32> to vector<4x256xf32>
    %17 = arith.subf %6, %16 : vector<4x256xf32>
    %18 = math.exp %17 : vector<4x256xf32>
    %cst_7 = arith.constant dense<0.000000e+00> : vector<256xf32>
    %19 = vector.multi_reduction <add>, %18, %cst_7 [0] : vector<4x256xf32> to vector<256xf32>
    %20 = vector.shape_cast %19 : vector<256xf32> to vector<1x256xf32>
    %21 = tpu.reciprocal %20 : vector<1x256xf32> -> vector<1x256xf32>
    %22 = vector.broadcast %21 : vector<1x256xf32> to vector<4x256xf32>
    %23 = arith.mulf %18, %22 : vector<4x256xf32>
    %24 = arith.mulf %6, %13 : vector<4x256xf32>
    %cst_8 = arith.constant dense<0.000000e+00> : vector<256xf32>
    %25 = vector.multi_reduction <add>, %24, %cst_8 [0] : vector<4x256xf32> to vector<256xf32>
    %26 = vector.shape_cast %25 : vector<256xf32> to vector<1x256xf32>
    %27 = arith.subf %26, %15 : vector<1x256xf32>
    %28 = math.log %20 : vector<1x256xf32>
    %29 = arith.subf %27, %28 : vector<1x256xf32>
    %cst_9 = arith.constant 0.000000e+00 : f32
    %30 = vector.broadcast %cst_9 : f32 to vector<1x256xf32>
    %31 = arith.subf %30, %29 : vector<1x256xf32>
    %c0_10 = arith.constant 0 : index
    %c0_11 = arith.constant 0 : index
    %c0_12 = arith.constant 0 : index
    %32 = vector.load %arg4[%c0_10, %c0_11, %c0_12] : memref<1x1x256xf32, #tpu.memory_space<vmem>>, vector<1x1x256xf32>
    %33 = vector.shape_cast %32 : vector<1x1x256xf32> to vector<1x256xf32>
    %34 = vector.shape_cast %31 : vector<1x256xf32> to vector<1x1x256xf32>
    tpu.vector_store %arg4[%c0_10, %c0_11, %c0_12], %34 {strides = array<i32>} : memref<1x1x256xf32, #tpu.memory_space<vmem>>, vector<1x1x256xf32>,
    %35 = arith.mulf %23, %13 : vector<4x256xf32>
    %cst_13 = arith.constant dense<0.000000e+00> : vector<4xf32>
    %36 = vector.multi_reduction <add>, %35, %cst_13 [1] : vector<4x256xf32> to vector<4xf32>
    %37 = vector.shape_cast %36 : vector<4xf32> to vector<4x1xf32>
    %cst_14 = arith.constant dense<0.000000e+00> : vector<4xf32>
    %38 = vector.multi_reduction <add>, %23, %cst_14 [1] : vector<4x256xf32> to vector<4xf32>
    %39 = vector.shape_cast %38 : vector<4xf32> to vector<4x1xf32>
    %cst_15 = arith.constant dense<0.000000e+00> : vector<4xf32>
    %40 = vector.multi_reduction <add>, %13, %cst_15 [1] : vector<4x256xf32> to vector<4xf32>
    %41 = vector.shape_cast %40 : vector<4xf32> to vector<4x1xf32>
    %c0_16 = arith.constant 0 : index
    %c0_17 = arith.constant 0 : index
    %42 = vector.load %arg5[%c0_16, %c0_17] : memref<4x1xf32, #tpu.memory_space<vmem>>, vector<4x1xf32>
    %43 = arith.addf %42, %37 : vector<4x1xf32>
    %c0_18 = arith.constant 0 : index
    %c0_19 = arith.constant 0 : index
    %44 = vector.load %arg5[%c0_18, %c0_19] : memref<4x1xf32, #tpu.memory_space<vmem>>, vector<4x1xf32>
    tpu.vector_store %arg5[%c0_18, %c0_19], %43 {strides = array<i32>} : memref<4x1xf32, #tpu.memory_space<vmem>>, vector<4x1xf32>,
    %c0_20 = arith.constant 0 : index
    %c0_21 = arith.constant 0 : index
    %45 = vector.load %arg6[%c0_20, %c0_21] : memref<4x1xf32, #tpu.memory_space<vmem>>, vector<4x1xf32>
    %46 = arith.subf %39, %37 : vector<4x1xf32>
    %47 = arith.addf %45, %46 : vector<4x1xf32>
    %c0_22 = arith.constant 0 : index
    %c0_23 = arith.constant 0 : index
    %48 = vector.load %arg6[%c0_22, %c0_23] : memref<4x1xf32, #tpu.memory_space<vmem>>, vector<4x1xf32>
    tpu.vector_store %arg6[%c0_22, %c0_23], %47 {strides = array<i32>} : memref<4x1xf32, #tpu.memory_space<vmem>>, vector<4x1xf32>,
    %c0_24 = arith.constant 0 : index
    %c0_25 = arith.constant 0 : index
    %49 = vector.load %arg7[%c0_24, %c0_25] : memref<4x1xf32, #tpu.memory_space<vmem>>, vector<4x1xf32>
    %50 = arith.subf %41, %37 : vector<4x1xf32>
    %51 = arith.addf %49, %50 : vector<4x1xf32>
    %c0_26 = arith.constant 0 : index
    %c0_27 = arith.constant 0 : index
    %52 = vector.load %arg7[%c0_26, %c0_27] : memref<4x1xf32, #tpu.memory_space<vmem>>, vector<4x1xf32>
    tpu.vector_store %arg7[%c0_26, %c0_27], %51 {strides = array<i32>} : memref<4x1xf32, #tpu.memory_space<vmem>>, vector<4x1xf32>,
    return
  }
  func.func @transform_0(%arg0: i32, %arg1: i32) -> (i32, i32, i32) {
    %c0_i32 = arith.constant 0 : i32
    %c0_i32_0 = arith.constant 0 : i32
    return %arg0, %c0_i32, %arg1 : i32, i32, i32
  }
  func.func @transform_1(%arg0: i32, %arg1: i32) -> (i32, i32, i32) {
    %c0_i32 = arith.constant 0 : i32
    %c0_i32_0 = arith.constant 0 : i32
    return %arg0, %c0_i32, %arg1 : i32, i32, i32
  }
  func.func @transform_2(%arg0: i32, %arg1: i32) -> (i32, i32, i32) {
    %c0_i32 = arith.constant 0 : i32
    %c0_i32_0 = arith.constant 0 : i32
    return %arg0, %c0_i32, %arg1 : i32, i32, i32
  }
  func.func @transform_3(%arg0: i32, %arg1: i32) -> (i32, i32) {
    %c0_i32 = arith.constant 0 : i32
    %c0_i32_0 = arith.constant 0 : i32
    %c0_i32_1 = arith.constant 0 : i32
    return %c0_i32, %c0_i32_0 : i32, i32
  }
  func.func @transform_4(%arg0: i32, %arg1: i32) -> (i32, i32) {
    %c0_i32 = arith.constant 0 : i32
    %c0_i32_0 = arith.constant 0 : i32
    %c0_i32_1 = arith.constant 0 : i32
    return %c0_i32, %c0_i32_0 : i32, i32
  }
  func.func @transform_5(%arg0: i32, %arg1: i32) -> (i32, i32) {
    %c0_i32 = arith.constant 0 : i32
    %c0_i32_0 = arith.constant 0 : i32
    %c0_i32_1 = arith.constant 0 : i32
    return %c0_i32, %c0_i32_0 : i32, i32
  }
}

</mosaic_0001>

<bundles_post_ra>
// kernel: tpu_custom_call.1
= control target key start
LH: loop header
LB: loop body
LE: loop exit
PB: predicated region body
PF: predicated region fallthrough
CT: control target
= control target key end

     0   :  { %11 = vsyncpa [#allocation3], 0  ;;  %s1168_s0 = inlined_call_operand.hbm [shape: s32[2,1,256], index: 0, kind: input, shape index: {}]   ;;  %s1169_s1 = inlined_call_operand.hbm [shape: f32[2,4,256], index: 1, kind: input, shape index: {}]   ;;  %s1170_s2 = inlined_call_operand.hbm [shape: f32[2,1,256], index: 2, kind: output, shape index: {0}]   ;;  %s1171_s3 = inlined_call_operand.vmem [shape: f32[4,1], index: 3, kind: output, shape index: {1}]   ;;  %s1172_s4 = inlined_call_operand.vmem [shape: f32[4,1], index: 4, kind: output, shape index: {2}]   ;;  %s1173_s5 = inlined_call_operand.vmem [shape: f32[4,1], index: 5, kind: output, shape index: {3}]  }
   0x1   :  { %13 = vsyncpa [#allocation3 + $0x1], 0 }
   0x2   :  { %14 = vsyncpa [#allocation6], 0 }
   0x3   :  { %16 = vsyncpa [#allocation6 + $0x1], 0 }
   0x4   :  { %17 = vsyncpa [#allocation4], 0 }
   0x5   :  { %19 = vsyncpa [#allocation4 + $0x1], 0  ;;  %s898_s18 = smov 0   ;;  %s900_s19 = smov 0  }
   0x6   :  { %s902_s20 = smov 0   ;;  %s904_s21 = smov 0  }
   0x7   :  { %s906_s22 = smov 0   ;;  %s908_s23 = smov 0  }
   0x8 LB: > { %s607_s24 = sadd.s32 4294967295, %s860_s23   ;;  %s608_s25 = sadd.s32 4294967294, %s860_s23   ;;  %s860_s23 = sphi %s908_s23, %s25_s23   ;;  %s856_s22 = sphi %s906_s22, %s1193_s22   ;;  %s852_s21 = sphi %s904_s21, %s1192_s21   ;;  %s848_s20 = sphi %s902_s20, %s1191_s20   ;;  %s844_s19 = sphi %s900_s19, %s1190_s19   ;;  %s840_s18 = sphi %s898_s18, %s1189_s18  }
   0x9   : > { %s37_s26 = sadd.s32 1, %s856_s22  ;;  %s46_s27 = sadd.s32 1, %s848_s20 }
   0xa   : > { %p39_p0 = scmp.ge.s32.totalorder %s37_s26, 2  ;;  %p53_p1 = scmp.ne.s32.totalorder %s848_s20, %s844_s19 }
   0xb   : > { %p54_p2 = scmp.eq.s32.totalorder %s860_s23, 0  ;;  %p59_p3 = scmp.ne.s32.totalorder %s844_s19, %s840_s18 }
   0xc   : > { %s1195_s26 = smov (%p39_p0, %s37_s26), 0  ;;  %p60_p5 = scmp.eq.s32.totalorder %s607_s24, 0 }
   0xd   : > { %p939_p4 = por %p54_p2, %p53_p1  ;;  %s41_s29 = ssub.s32 %s856_s22, %s1195_s26 }
   0xe   : > { %p113_p6 = scmp.eq.s32.totalorder %s607_s24, 1  ;;  %p44_p7 = scmp.eq.s32.totalorder %s41_s29, 0 }
   0xf   : > { %p945_p8 = por %p60_p5, %p59_p3  ;;  %p119_p10 = scmp.eq.s32.totalorder %s608_s25, 1 }
  0x10   : > { %p949_p9 = por %p113_p6, %p53_p1  ;;  %p650_p13 = scmp.lt.s32.totalorder %s860_s23, 2 }
  0x11   : > { %s1177_s30 = scalar_select %p945_p8, 1, 0 }
  0x12   : > { %s1178_s6 = scalar_select %p949_p9, 1, 0 }
  0x13   : > { %s954_s7 = scalar_select %p44_p7, %s848_s20, %s46_s27  }
  0x14   : > { %p956_p11 = por %p119_p10, %p59_p3  ;;  %s963_s9 = sand.u32 1, %s848_s20  }
  0x15   : > { %s611_s10 = sshll.u32 %s963_s9, 1  ;;  %s629_s11 = sshll.u32 %s856_s22, 5 }
  0x16   : > { %s1179_s8 = scalar_select %p956_p11, 1, 0 }
  0x17   : > { %s970_s14 = scalar_lea.hbm %s1168_s0, %s629_s11  ;;  %s206_s15 = scalar_lea.vmem [#allocation2], %s611_s10 }
  0x18   : > { %s216_s16 = sshll.u32 %s206_s15, 4  ;;  %p976_p0 = pnand %p650_p13, %p939_p4  ;;  %s972_s16 = int_to_ptr.vmem [resolvable:$true] %s216_s16 }
  0x19   : > { %s203_s24 = scalar_lea.sflag [#allocation3], %s963_s9  ;;  %s714_s25 = scalar_lea.hbm %s970_s14, 32 }
  0x1a   : > { %p715_p3 = scmp.ne.s32.totalorder %s970_s14, %s714_s25  ;;  %p716_p5 = pneg %p976_p0 }
  0x1b   : > { %s719_s28 = scalar_lea.hbm %s1168_s0, 64  ;;  %p720_p4 = scmp.lt.u32.totalorder %s970_s14, %s1168_s0 }
  0x1c   : > { %p717_p6 = pnand %p716_p5, %p715_p3  ;;  %p721_p10 = scmp.lt.u32.totalorder %s719_s28, %s714_s25 }
  0x1d   : > { %p723_p12 = scmp.lt.u32.totalorder %s714_s25, %s970_s14 }
  0x1e   : > { %p718_p7 = pneg %p717_p6  ;;  %p722_p13 = por %p721_p10, %p720_p4 }
  0x20   : > { %p724_p1 = por %p723_p12, %p722_p13 }
  0x22   : > { %p725_p2 = pnand %p724_p1, %p718_p7 }
  0x24   : > { %728 = shalt.err (!%p725_p2)
}
  0x25   : > { %s729_s12 = scalar_lea.vmem %s972_s16, 32  ;;  %s862_s13 = smov [#allocation2]  }
  0x26   : > { %p730_p3 = scmp.ne.s32.totalorder %s972_s16, %s729_s12  ;;  %s734_s15 = sshll.u32 %s862_s13, 4  ;;  %s735_s15 = int_to_ptr.vmem [resolvable:$false] %s734_s15 }
  0x27   : > { %s736_s27 = scalar_lea.vmem %s735_s15, 64  ;;  %p737_p9 = scmp.lt.s32.totalorder %s972_s16, %s735_s15 }
  0x28   : > { %p732_p6 = pnand %p730_p3, %p716_p5  ;;  %p738_p4 = scmp.lt.s32.totalorder %s736_s27, %s729_s12 }
  0x2a   : > { %p733_p11 = pneg %p732_p6  ;;  %p739_p10 = por %p738_p4, %p737_p9 }
  0x2c   : > { %p740_p12 = pnand %p739_p10, %p733_p11 }
  0x2e   : > { %743 = shalt.err (!%p740_p12)
}
  0x2f   : > { %642 = dma.hbm_to_vmem [thread:$0]  (!%p976_p0), %s970_s14, 32, %s972_s16, %s203_s24  }
  0x30   : > { %p1181_p1 = scmp.lt.s32.totalorder %s860_s23, 3  ;;  %p1182_p2 = scmp.ge.s32.totalorder %s860_s23, 1 }
  0x31   : > { %s614_s29 = sshll.u32 %s963_s9, 3  ;;  %s630_s28 = sshll.u32 %s856_s22, 7 }
  0x32   : > { %p1012_p7 = pnand %p1182_p2, %p1181_p1  ;;  %s1021_s12 = scalar_lea.hbm %s1169_s1, %s630_s28 }
  0x33   : > { %s227_s13 = scalar_lea.vmem [#allocation5], %s614_s29  ;;  %s224_s14 = scalar_lea.sflag [#allocation6], %s963_s9 }
  0x34   : > { %s1183_s25 = scalar_select %p1012_p7, 1, 0 }
  0x35   : > { %s237_s15 = sshll.u32 %s227_s13, 4  ;;  %s744_s16 = scalar_lea.hbm %s1021_s12, 128  ;;  %s238_s15 = int_to_ptr.vmem [resolvable:$true] %s237_s15 }
  0x36   : > { %p745_p9 = scmp.ne.s32.totalorder %s1021_s12, %s744_s16  ;;  %s749_s10 = scalar_lea.hbm %s1169_s1, 256 }
  0x37   : > { %p750_p3 = scmp.lt.u32.totalorder %s1021_s12, %s1169_s1  ;;  %p751_p6 = scmp.lt.u32.totalorder %s749_s10, %s744_s16 }
  0x38   : > { %p747_p11 = pnand %p745_p9, %p716_p5  ;;  %p753_p10 = scmp.lt.u32.totalorder %s744_s16, %s1021_s12 }
  0x39   : > { %p752_p4 = por %p751_p6, %p750_p3 }
  0x3a   : > { %p748_p13 = pneg %p747_p11 }
  0x3b   : > { %p754_p12 = por %p753_p10, %p752_p4 }
  0x3d   : > { %p755_p1 = pnand %p754_p12, %p748_p13 }
  0x3f   : > { %758 = shalt.err (!%p755_p1)
}
  0x40   : > { %s759_s9 = scalar_lea.vmem %s238_s15, 128  ;;  %s863_s29 = smov [#allocation5]  }
  0x41   : > { %p760_p2 = scmp.ne.s32.totalorder %s238_s15, %s759_s9  ;;  %s764_s13 = sshll.u32 %s863_s29, 4  ;;  %s765_s13 = int_to_ptr.vmem [resolvable:$false] %s764_s13 }
  0x42   : > { %s766_s24 = scalar_lea.vmem %s765_s13, 256  ;;  %p767_p8 = scmp.lt.s32.totalorder %s238_s15, %s765_s13 }
  0x43   : > { %p762_p9 = pnand %p760_p2, %p716_p5  ;;  %p768_p7 = scmp.lt.s32.totalorder %s766_s24, %s759_s9 }
  0x45   : > { %p763_p11 = pneg %p762_p9  ;;  %p769_p3 = por %p768_p7, %p767_p8 }
  0x47   : > { %p770_p6 = pnand %p769_p3, %p763_p11 }
  0x49   : > { %773 = shalt.err (!%p770_p6)
}
  0x4a   : > { %645 = dma.hbm_to_vmem [thread:$0]  (!%p976_p0), %s1021_s12, 128, %s238_s15, %s224_s14  }
  0x4b   : > { %p1184_p13 = scmp.ne.s32.totalorder %s1183_s25, 0 }
  0x4c   : > { %s1046_s16 = sand.u32 (!%p1184_p13), 1, %s844_s19   ;;  %p1185_p5 = scmp.ne.s32.totalorder (!%p1184_p13), %s1177_s30, 0 }
  0x4d   : > { %246 = sbr.rel (%p1184_p13) target bundleno = 318 (0x13e), region = 28  ;;  %s618_s27 = sshll.u32 (!%p1184_p13), %s1046_s16, 1 }
  0x4e   : > { %s249_s10 = scalar_lea.sflag (!%p1184_p13), [#allocation3], %s1046_s16  ;;  %s252_s28 = scalar_lea.vmem (!%p1184_p13), [#allocation2], %s618_s27 }
  0x54   : > { %827 = dma.done.wait (%p1185_p5), %s249_s10, 32  }
  0x55   : > { %829 = vsyncadd (%p1185_p5), %s249_s10, 4294967264  ;;  %s619_s17 = sshll.u32 %s1046_s16, 3  ;;  %s258_s25 = scalar_lea.sflag [#allocation6], %s1046_s16 }
  0x56   : > { %s261_s12 = scalar_lea.vmem [#allocation5], %s619_s17 }
  0x57   : > { %831 = dma.done.wait (%p1185_p5), %s258_s25, 128  }
  0x58   : > { %833 = vsyncadd (%p1185_p5), %s258_s25, 4294967168  ;;  %p296_p8 = scmp.eq.s32.totalorder %s852_s21, 0  ;;  %s1061_s15 = scalar_lea.vmem [#allocation7], %s618_s27 }
  0x59   : > { %vm302_vm0 = vcmask (%p296_p8), 3072   ;;  %v864_v0 = vmov (%p296_p8), 0.0  }
  0x5a   : > { %301 = sbr.rel (!%p296_p8) target bundleno = 97 (0x61), region = 40  ;;  %303 = vst.msk [vmem:[%s1171_s3] sm:$0xf] (%p296_p8), %vm302_vm0, %v864_v0  ;;  %304 = vst.msk [vmem:[%s1172_s4] sm:$0xf] (%p296_p8), %vm302_vm0, %v864_v0 }
  0x5b   : > { %305 = vst.msk [vmem:[%s1173_s5] sm:$0xf] (%p296_p8), %vm302_vm0, %v864_v0 }
  0x61 PF: > { %v308_v1 = vlaneseq  ;;  %vm327_vm1 = vcmask 1043456   ;;  %v306_v2 = vld [vmem:[%s261_s12] sm:$0xff]  ;;  %v307_v7 = vld [vmem:[%s252_s28] sm:$0x3]  ;;  %v865_v19 = vmov 0.0   ;;  %s632_s30 = sshll.u32 %s852_s21, 5 }
  0x62   : > { %v325_v3 = vcombine.high %v306_v2, %v306_v2  ;;  %v328_v4 = vsel %vm327_vm1, %v306_v2, -inf  ;;  %s479_s27 = sshll.u32 %s1061_s15, 4  ;;  %s1106_s17 = scalar_lea.hbm %s1170_s2, %s632_s30  ;;  %s480_s27 = int_to_ptr.vmem [resolvable:$true] %s479_s27 }
  0x63   : > { %v1074_v5 = vshrl.u32 %v308_v1, 7  ;;  %v329_v6 = vrot.slane %v328_v4, 4  ;;  %vm425_vm4 = vcmp.lt.s32.totalorder %v308_v1, 256  ;;  %s463_s25 = scalar_lea.sflag [#allocation4], %s1046_s16  ;;  %s774_s12 = scalar_lea.vmem %s480_s27, 32 }
  0x64   : > { %v335_v8 = vsel %vm327_vm1, %v325_v3, -inf  ;;  %p775_p0 = scmp.ne.s32.totalorder %s480_s27, %s774_s12  ;;  %p1186_p7 = scmp.ne.s32.totalorder %s1178_s6, 0 }
  0x65   : > { %v312_v9 = vsub.s32 0, %v1074_v5  ;;  %v316_v10 = vsub.s32 1, %v1074_v5  ;;  %v330_v11 = vmax.f32 %v328_v4, %v329_v6  ;;  %v336_v12 = vrot.slane %v335_v8, 4  ;;  %s867_s14 = smov [#allocation7]  }
  0x66   : > { %p776_p4 = pnand %p775_p0, %p1186_p7  ;;  %s778_s11 = sshll.u32 %s867_s14, 4  ;;  %s779_s11 = int_to_ptr.vmem [resolvable:$false] %s778_s11 }
  0x67   : > { %v313_v13 = vrot.slane %v307_v7, %v312_v9  ;;  %v317_v14 = vrot.slane %v307_v7, %v316_v10  ;;  %v331_v15 = vrot.slane %v330_v11, 2  ;;  %v337_v16 = vmax.f32 %v335_v8, %v336_v12  ;;  %s780_s9 = scalar_lea.vmem %s779_s11, 64  ;;  %p781_p12 = scmp.lt.s32.totalorder %s480_s27, %s779_s11 }
  0x68   : > { %p777_p10 = pneg %p776_p4  ;;  %p782_p1 = scmp.lt.s32.totalorder %s780_s9, %s774_s12 }
  0x69   : > { %vm318_vm2 = vcmp.eq.s32.totalorder %v1074_v5, %v313_v13  ;;  %vm319_vm3 = vcmp.eq.s32.totalorder %v1074_v5, %v317_v14  ;;  %v332_v17 = vmax.f32 %v330_v11, %v331_v15  ;;  %v338_v18 = vrot.slane %v337_v16, 2 }
  0x6a   : > { %v622_v20 = vsel %vm318_vm2, 1.0, %v865_v19  ;;  %v623_v21 = vsel %vm319_vm3, 1.0, %v865_v19  ;;  %p783_p2 = por %p782_p1, %p781_p12 }
  0x6b   : > { %v445_v22 = vsel %vm327_vm1, %v622_v20, 0.0  ;;  %v446_v23 = vsel %vm327_vm1, %v623_v21, 0.0  ;;  %v333_v24 = vrot.slane %v332_v17, 1  ;;  %v339_v25 = vmax.f32 %v337_v16, %v338_v18 }
  0x6c   : > { %v447_v26 = vadd.f32 %v446_v23, %v445_v22  ;;  %v375_v44 = vcombine.low %v622_v20, %v623_v21  ;;  %p784_p9 = pnand %p783_p2, %p777_p10 }
  0x6d   : > { %v1083_v27 = vmax.f32 %v332_v17, %v333_v24  ;;  %v340_v28 = vrot.slane %v339_v25, 1  ;;  %v866_v24 = vmov 1966171168  }
  0x6e   : > { %448 = vadd.xlane.f32.xlu1 %v447_v26  ;;  %v377_v47 = vmul.f32 %v375_v44, %v306_v2 }
  0x6f   : > { %v1085_v29 = vmax.f32 %v339_v25, %v340_v28  ;;  %v409_v25 = vunpack.c.l.s4 %v866_v24 }
  0x70   : > { %v379_v51 = vcombine.high %v377_v47, %v377_v47  ;;  %v381_v52 = vsel %vm327_vm1, %v377_v47, 0.0 }
  0x71   : > { %v344_v30 = vcombine.low %v1083_v27, %v1085_v29  ;;  %v382_v54 = vrot.slane %v381_v52, 4 }
  0x72   : > { %v388_v53 = vsel %vm327_vm1, %v379_v51, 0.0 }
  0x73   : > { %v346_v31 = vsub.f32 %v306_v2, %v344_v30  ;;  %v389_v55 = vrot.slane %v388_v53, 4  ;;  %v383_v58 = vadd.f32 %v382_v54, %v381_v52  ;;  %v410_v30 = vunpack.c.0.s8 %v409_v25 }
  0x75   : > { %v347_v32 = vmul.f32 1.442695, %v346_v31  ;;  %v390_v59 = vadd.f32 %v389_v55, %v388_v53  ;;  %v384_v62 = vrot.slane %v383_v58, 2 }
  0x77   : > { %704 = vpow2.f32 %v347_v32  ;;  %v391_v63 = vrot.slane %v390_v59, 2  ;;  %v385_v6 = vadd.f32 %v384_v62, %v383_v58  ;;  %v413_v32 = vsub.s32 %v410_v30, %v1074_v5 }
  0x79   : > { %v392_v7 = vadd.f32 %v391_v63, %v390_v59  ;;  %v386_v13 = vrot.slane %v385_v6, 1 }
  0x7b   : > { %v393_v14 = vrot.slane %v392_v7, 1  ;;  %v387_v15 = vadd.f32 %v386_v13, %v385_v6 }
  0x7d   : > { %v394_v16 = vadd.f32 %v393_v14, %v392_v7  ;;  %v395_v19 = vsub.f32 %v387_v15, %v1083_v27 }
  0x7f   : > { %v396_v20 = vsub.f32 %v394_v16, %v1085_v29 }
  0x81   : > { %v705_v33 = vpop.eup %704 }
  0x82   : > { %v350_v34 = vcombine.high %v705_v33, %v705_v33  ;;  %v352_v35 = vsel %vm327_vm1, %v705_v33, 0.0 }
  0x83   : > { %v353_v36 = vrot.slane %v352_v35, 4 }
  0x84   : > { %v359_v37 = vsel %vm327_vm1, %v350_v34, 0.0 }
  0x85   : > { %v354_v38 = vadd.f32 %v353_v36, %v352_v35  ;;  %v360_v39 = vrot.slane %v359_v37, 4 }
  0x87   : > { %v355_v40 = vrot.slane %v354_v38, 2  ;;  %v361_v41 = vadd.f32 %v360_v39, %v359_v37 }
  0x89   : > { %v356_v42 = vadd.f32 %v355_v40, %v354_v38  ;;  %v362_v43 = vrot.slane %v361_v41, 2 }
  0x8b   : > { %v357_v45 = vrot.slane %v356_v42, 1  ;;  %v363_v46 = vadd.f32 %v362_v43, %v361_v41 }
  0x8d   : > { %v358_v48 = vadd.f32 %v357_v45, %v356_v42  ;;  %v364_v49 = vrot.slane %v363_v46, 1 }
  0x8f   : > { %v365_v50 = vadd.f32 %v364_v49, %v363_v46  ;;  %706 = vrcp.f32 %v358_v48 }
  0x91   : > { %708 = vrcp.f32 %v365_v50 }
  0x92   : > { %710 = vlog2.f32 %v358_v48 }
  0x93   : > { %712 = vlog2.f32 %v365_v50 }
  0x99   : > { %v707_v56 = vpop.eup %706 }
  0x9b   : > { %v709_v57 = vpop.eup %708 }
  0x9c   : > { %v370_v60 = vcombine.low %v707_v56, %v709_v57  ;;  %v711_v17 = vpop.eup %710 }
  0x9d   : > { %v713_v18 = vpop.eup %712  ;;  %v398_v21 = vmul.f32 0.6931472, %v711_v17 }
  0x9e   : > { %v372_v61 = vmul.f32 %v705_v33, %v370_v60  ;;  %v400_v22 = vmul.f32 0.6931472, %v713_v18 }
  0x9f   : > { %v401_v23 = vsub.f32 %v395_v19, %v398_v21 }
  0xa0   : > { %v428_v0 = vmul.f32 %v375_v44, %v372_v61  ;;  %v438_v2 = vcombine.high %v372_v61, %v372_v61  ;;  %v440_v9 = vsel %vm327_vm1, %v372_v61, 0.0  ;;  %v402_v26 = vsub.f32 %v396_v20, %v400_v22 }
  0xa1   : > { %v403_v28 = vsub.f32 0.0, %v401_v23 }
  0xa2   : > { %v430_v3 = vcombine.high %v428_v0, %v428_v0  ;;  %v432_v4 = vsel %vm327_vm1, %v428_v0, 0.0  ;;  %v441_v10 = vsel %vm327_vm1, %v438_v2, 0.0  ;;  %v404_v31 = vsub.f32 0.0, %v402_v26 }
  0xa3   : > { %v442_v12 = vadd.f32 %v441_v10, %v440_v9 }
  0xa4   : > { %v433_v8 = vsel %vm327_vm1, %v430_v3, 0.0  ;;  %v407_v33 = vcombine.low %v403_v28, %v404_v31 }
  0xa5   : > { %v434_v11 = vadd.f32 %v433_v8, %v432_v4 }
  0xa6   : > { %v414_v27 = vrot.slane %v407_v33, %v413_v32 }
  0xa7   : > { %435 = vadd.xlane.f32.xlu0 %v434_v11 }
  0xa8   : > { %v421_v34 = vrot.slane %v414_v27, %v413_v32 }
  0xaa   : > { %427 = vst.msk [vmem:[%s1061_s15] sm:$0x3] %vm425_vm4, %v421_v34 }
  0xab   : > { %443 = vadd.xlane.f32.xlu0 %v442_v12 }
  0xac   : > { %787 = shalt.err (!%p784_p9)
}
  0xad   : > { %s788_s21 = scalar_lea.hbm %s1106_s17, 32  ;;  %s792_s29 = scalar_lea.hbm %s1170_s2, 64 }
  0xae   : > { %p789_p11 = scmp.ne.s32.totalorder %s1106_s17, %s788_s21  ;;  %p793_p13 = scmp.lt.u32.totalorder %s1106_s17, %s1170_s2 }
  0xaf   : > { %p794_p5 = scmp.lt.u32.totalorder %s792_s29, %s788_s21  ;;  %p796_p0 = scmp.lt.u32.totalorder %s788_s21, %s1106_s17 }
  0xb0   : > { %p790_p3 = pnand %p789_p11, %p1186_p7 }
  0xb1   : > { %p795_p8 = por %p794_p5, %p793_p13 }
  0xb2   : > { %p791_p6 = pneg %p790_p3 }
  0xb3   : > { %p797_p4 = por %p796_p0, %p795_p8 }
  0xb5   : > { %p798_p10 = pnand %p797_p4, %p791_p6 }
  0xb7   : > { %801 = shalt.err (!%p798_p10)
}
  0xb8   : > { %637 = dma.vmem_to_hbm [thread:$0]  (%p1186_p7), %s480_s27, 32, %s1106_s17, %s463_s25   ;;  %v450_v5 = vld [vmem:[%s1171_s3] sm:$0xf]  ;;  %vm452_vm5 = vcmask 3072  }
  0xb9   : > { %v458_v29 = vld [vmem:[%s1173_s5] sm:$0xf] }
  0xba   : > { %v454_v39 = vld [vmem:[%s1172_s4] sm:$0xf] }
  0xfb   : > { %v449_v1 = vpop.xlane.xlu1 %448 }
 0x134   : > { %v436_v35 = vpop.xlane.xlu0 %435 }
 0x135   : > { %v451_v36 = vadd.f32 %v450_v5, %v436_v35  ;;  %v459_v37 = vsub.f32 %v449_v1, %v436_v35 }
 0x137   : > { %453 = vst.msk [vmem:[%s1171_s3] sm:$0xf] %vm452_vm5, %v451_v36  ;;  %v460_v38 = vadd.f32 %v459_v37, %v458_v29 }
 0x138   : > { %v444_v40 = vpop.xlane.xlu0 %443 }
 0x139   : > { %461 = vst.msk [vmem:[%s1173_s5] sm:$0xf] %vm452_vm5, %v460_v38  ;;  %v455_v41 = vsub.f32 %v444_v40, %v436_v35 }
 0x13b   : > { %v456_v42 = vadd.f32 %v455_v41, %v454_v39 }
 0x13d   : > { %457 = vst.msk [vmem:[%s1172_s4] sm:$0xf] %vm452_vm5, %v456_v42 }
 0x13e PF: > { %s509_s16 = sand.u32 1, %s840_s18   ;;  %p1187_p7 = scmp.ne.s32.totalorder %s1179_s8, 0 }
 0x13f   : > { %p1188_p12 = scmp.ge.s32.totalorder %s860_s23, 2  ;;  %s510_s15 = scalar_lea.sflag [#allocation4], %s509_s16 }
 0x141   : > { %p647_p1 = pnand %p1188_p12, %p1187_p7 }
 0x143   : > { %835 = dma.done.wait (!%p647_p1), %s510_s15, 32  }
 0x144   : > { %837 = vsyncadd (!%p647_p1), %s510_s15, 4294967264  ;;  %s25_s23 = sadd.s32 1, %s860_s23   ;;  %s1189_s18 = smov %s844_s19 }
 0x145   : > { %p22_p2 = scmp.ge.s32.totalorder %s25_s23, 4   ;;  %s1190_s19 = smov %s848_s20 }
 0x146   : > { %s1191_s20 = smov %s954_s7  ;;  %s1192_s21 = smov %s856_s22 }
 0x147   : > { %s1193_s22 = smov %s1195_s26  ;;  %24 = sbr.rel (!%p22_p2) target bundleno = 8 (0x8), region = 114 }
 0x14e   :  { %515 = vsyncpa [#allocation3], 1 }
 0x14f   :  { %517 = vsyncpa [#allocation3 + $0x1], 1 }
 0x150   :  { %518 = vsyncpa [#allocation6], 1 }
 0x151   :  { %520 = vsyncpa [#allocation6 + $0x1], 1 }
 0x152   :  { %521 = vsyncpa [#allocation4], 1 }
 0x153   :  { %523 = vsyncpa [#allocation4 + $0x1], 1 }

</bundles_post_ra>
